<compile_context>
chip_gen: v6e
topology: v6e:2x2x1
jax: 0.10.0
libtpu: 0.0.40
codegen_flags: <defaults>
</compile_context>

<pallas_src>
import numpy as np
import jax
import jax.numpy as jnp
from jax.experimental import pallas as pl
from jax.experimental.pallas import tpu as pltpu


# ----------------------------------------------------------------------------
# Fused kernel: all GIN layers + per-layer pooling + final pool-MLP.
# grid = (num_layers,), sequential ("arbitrary"); node features carried in VMEM scratch.
# ----------------------------------------------------------------------------
def _gin_fused_kernel(x0_hbm, a_ref, p_ref, wpk_ref, bpk_ref, wp2_ref, bp2_ref,
                      out_ref, x_cur, acc, dma_sem):
    t = pl.program_id(0)
    Hp = x_cur.shape[1]

    @pl.when(t == 0)
    def _():
        # x0 is only needed once: pull it from HBM into the VMEM carry buffer.
        cp = pltpu.make_async_copy(x0_hbm, x_cur, dma_sem)
        cp.start()
        cp.wait()
        acc[...] = jnp.zeros_like(acc)

    # GINConv (train_eps=False, eps=0):  (I + A) @ x  ==  x_i + sum_{j in N(i)} x_j
    # A_hat stored bf16 (exact small integers); accumulate in f32 on the MXU.
    agg = jnp.dot(a_ref[...].astype(jnp.float32), x_cur[...],
                  preferred_element_type=jnp.float32)

    # Packed per-layer parameters (BN already folded into weights/biases in glue code).
    w1 = wpk_ref[0:Hp, :]              # Linear1 (BN-folded)
    w2 = wpk_ref[Hp:2 * Hp, :]         # Linear2 (outer-BN-folded)
    wp1_t = wpk_ref[2 * Hp:3 * Hp, :]  # layer-t block of pool-MLP first Linear (BN-folded)
    b1 = bpk_ref[0:1, :]
    b2 = bpk_ref[1:2, :]
    bp1 = bpk_ref[2:3, :]

    # MLP([in, hidden, hidden], act='relu'): Linear -> BN(eval) -> ReLU -> Linear -> BN(eval)
    h = jnp.dot(agg, w1, preferred_element_type=jnp.float32) + b1
    h = jnp.maximum(h, 0.0)
    h = jnp.dot(h, w2, preferred_element_type=jnp.float32) + b2
    x_cur[...] = h

    # global_add_pool(x, batch) == P @ x ; immediately contract with this layer's slice of
    # the pool-MLP first Linear (== the concat-then-matmul of the reference, decomposed).
    pooled = jnp.dot(p_ref[...], h, preferred_element_type=jnp.float32)        # (G, Hp)
    acc[...] += jnp.dot(pooled, wp1_t, preferred_element_type=jnp.float32)     # (G, Hp)

    @pl.when(t == pl.num_programs(0) - 1)
    def _():
        # pool-MLP epilogue: bias (BN-folded) -> ReLU -> Linear -> bias
        z = jnp.maximum(acc[...] + bp1, 0.0)
        out_ref[...] = (jnp.dot(z, wp2_ref[...], preferred_element_type=jnp.float32)
                        + bp2_ref[0:1, :])


def gin_fused_forward(x0, a_hat_bf16, pmat, wpack, bpack, wp2p, bp2p):
    N, Hp = x0.shape
    G = pmat.shape[0]
    OutP = wp2p.shape[1]
    L = bpack.shape[0] // 8

    return pl.pallas_call(
        _gin_fused_kernel,
        out_shape=jax.ShapeDtypeStruct((G, OutP), jnp.float32),
        grid_spec=pltpu.PrefetchScalarGridSpec(
            num_scalar_prefetch=0,
            grid=(L,),
            in_specs=[
                pl.BlockSpec(memory_space=pl.ANY),               # x0 stays in HBM
                pl.BlockSpec((N, N), lambda t: (0, 0)),          # A_hat (bf16), resident
                pl.BlockSpec((G, N), lambda t: (0, 0)),          # pooling matrix, resident
                pl.BlockSpec((3 * Hp, Hp), lambda t: (t, 0)),    # [W1 | W2 | Wp1_t] per layer
                pl.BlockSpec((8, Hp), lambda t: (t, 0)),         # [b1; b2; bp1] per layer
                pl.BlockSpec((Hp, OutP), lambda t: (0, 0)),      # pool-MLP second Linear
                pl.BlockSpec((8, OutP), lambda t: (0, 0)),       # its bias
            ],
            out_specs=pl.BlockSpec((G, OutP), lambda t: (0, 0)),
            scratch_shapes=[
                pltpu.VMEM((N, Hp), jnp.float32),   # node-feature carry
                pltpu.VMEM((G, Hp), jnp.float32),   # pool-MLP hidden accumulator
                pltpu.SemaphoreType.DMA(()),        # x0 HBM -> VMEM copy
            ],
        ),
        compiler_params=pltpu.CompilerParams(
            dimension_semantics=("arbitrary",),     # layer loop is sequential (carry)
            vmem_limit_bytes=64 * 1024 * 1024,
        ),
    )(x0, a_hat_bf16, pmat, wpack, bpack, wp2p, bp2p)


# ----------------------------------------------------------------------------
# Glue: densify graph, fold BN into weights, pad to lane width, pack param streams.
# ----------------------------------------------------------------------------
def _round_up(v, m):
    return ((v + m - 1) // m) * m


def gin_classic_forward(x, edge_index, batch, params, num_graphs):
    N, C_in = x.shape
    L, hid = params["w1"].shape[0], params["w1"].shape[2]
    out_c = params["wp2"].shape[1]
    Hp = _round_up(hid, 128)        # hidden >= in_channels (module contract)
    OutP = _round_up(out_c, 128)

    # densify graph structure
    src, dst = edge_index[0], edge_index[1]
    a_hat = jnp.zeros((N, N), jnp.float32).at[dst, src].add(1.0) + jnp.eye(N, dtype=jnp.float32)
    a_hat_bf16 = a_hat.astype(jnp.bfloat16)   # small-integer entries: exact in bf16
    pmat = (jnp.arange(num_graphs, dtype=jnp.int32)[:, None] == batch[None, :]).astype(jnp.float32)

    # fold eval-mode BatchNorms into weights / biases
    s1 = params["s1"][:, 0, :]                         # (L, hid)
    t1 = params["t1"][:, 0, :]
    osc = params["osc"][:, 0, :]
    osh = params["osh"][:, 0, :]
    w1f = params["w1"] * s1[:, None, :]                # (L, hid, hid)
    b1f = params["b1"][:, 0, :] * s1 + t1              # (L, hid)
    w2f = params["w2"] * osc[:, None, :]
    b2f = params["b2"][:, 0, :] * osc + osh
    wp1f = params["wp1"] * params["sp"]                # (L*hid, hid)
    bp1f = params["bp1"] * params["sp"] + params["tp"] # (1, hid)

    # pad to lane width and pack per-layer streams
    w1p = jnp.zeros((L, Hp, Hp), jnp.float32).at[:, :hid, :hid].set(w1f)
    w2p = jnp.zeros((L, Hp, Hp), jnp.float32).at[:, :hid, :hid].set(w2f)
    wp1p = jnp.zeros((L, Hp, Hp), jnp.float32).at[:, :hid, :hid].set(wp1f.reshape(L, hid, hid))
    wpack = jnp.concatenate([w1p, w2p, wp1p], axis=1).reshape(L * 3 * Hp, Hp)

    bpack = jnp.zeros((L, 8, Hp), jnp.float32)
    bpack = bpack.at[:, 0, :hid].set(b1f)
    bpack = bpack.at[:, 1, :hid].set(b2f)
    bpack = bpack.at[:, 2, :hid].set(jnp.broadcast_to(bp1f[0], (L, hid)))
    bpack = bpack.reshape(L * 8, Hp)

    wp2p = jnp.zeros((Hp, OutP), jnp.float32).at[:hid, :out_c].set(params["wp2"])
    bp2p = jnp.zeros((8, OutP), jnp.float32).at[0, :out_c].set(params["bp2"][0])

    # pad input features to lane width (padded W1 rows are zero)
    x0 = jnp.zeros((N, Hp), jnp.float32).at[:, :C_in].set(x.astype(jnp.float32))

    out_p = gin_fused_forward(x0, a_hat_bf16, pmat, wpack, bpack, wp2p, bp2p)
    return out_p[:, :out_c]


# ----------------------------------------------------------------------------
# Pure-JAX reference (unfolded, unpadded) + parameter init
# ----------------------------------------------------------------------------
def reference_forward(x, edge_index, batch, params, num_graphs, in_channels):
    N = x.shape[0]
    L = params["w1"].shape[0]
    src, dst = edge_index[0], edge_index[1]
    a_hat = jnp.zeros((N, N), jnp.float32).at[dst, src].add(1.0) + jnp.eye(N, dtype=jnp.float32)
    pmat = (jnp.arange(num_graphs, dtype=jnp.int32)[:, None] == batch[None, :]).astype(jnp.float32)

    h = x.astype(jnp.float32)
    pooled = []
    for l in range(L):
        w1 = params["w1"][l][:in_channels if l == 0 else None]
        agg = a_hat @ h
        z = agg @ w1 + params["b1"][l, 0]
        z = z * params["s1"][l, 0] + params["t1"][l, 0]
        z = jnp.maximum(z, 0.0)
        z = z @ params["w2"][l] + params["b2"][l, 0]
        z = z * params["osc"][l, 0] + params["osh"][l, 0]
        h = z
        pooled.append(pmat @ h)
    zc = jnp.concatenate(pooled, axis=1)
    y = zc @ params["wp1"] + params["bp1"]
    y = y * params["sp"] + params["tp"]
    y = jnp.maximum(y, 0.0)
    return y @ params["wp2"] + params["bp2"]


def init_params(key, in_channels, hidden, out_channels, num_layers, use_batch_norm):
    H, L = hidden, num_layers
    ks = iter(jax.random.split(key, 64))
    bn_eps = 1e-5

    def lin(k, fan_in, shape):
        return (jax.random.normal(k, shape, jnp.float32) / np.sqrt(fan_in)).astype(jnp.float32)

    w1 = jnp.zeros((L, H, H), jnp.float32)
    b1 = jnp.zeros((L, 1, H), jnp.float32)
    s1 = jnp.zeros((L, 1, H), jnp.float32)
    t1 = jnp.zeros((L, 1, H), jnp.float32)
    w2 = jnp.zeros((L, H, H), jnp.float32)
    b2 = jnp.zeros((L, 1, H), jnp.float32)
    osc = jnp.zeros((L, 1, H), jnp.float32)
    osh = jnp.zeros((L, 1, H), jnp.float32)

    for l in range(L):
        cin = in_channels if l == 0 else H
        w1_raw = lin(next(ks), cin, (cin, H))
        w1 = w1.at[l, :cin, :].set(w1_raw)          # zero-padded rows beyond cin
        b1 = b1.at[l, 0].set(jax.random.normal(next(ks), (H,)) * 0.01)
        # inner MLP BatchNorm (eval): running_mean=0, running_var=1
        g = 1.0 + 0.1 * jax.random.normal(next(ks), (H,))
        bta = 0.1 * jax.random.normal(next(ks), (H,))
        s1 = s1.at[l, 0].set(g / jnp.sqrt(1.0 + bn_eps))
        t1 = t1.at[l, 0].set(bta)
        w2 = w2.at[l].set(lin(next(ks), H, (H, H)))
        b2 = b2.at[l, 0].set(jax.random.normal(next(ks), (H,)) * 0.01)
        if use_batch_norm:
            g = 1.0 + 0.1 * jax.random.normal(next(ks), (H,))
            bta = 0.1 * jax.random.normal(next(ks), (H,))
            osc = osc.at[l, 0].set(g / jnp.sqrt(1.0 + bn_eps))
            osh = osh.at[l, 0].set(bta)
        else:
            osc = osc.at[l, 0].set(jnp.ones((H,)))

    wp1 = lin(next(ks), L * H, (L * H, H))
    bp1 = (jax.random.normal(next(ks), (1, H)) * 0.01).astype(jnp.float32)
    g = 1.0 + 0.1 * jax.random.normal(next(ks), (1, H))
    bta = 0.1 * jax.random.normal(next(ks), (1, H))
    sp = (g / jnp.sqrt(1.0 + bn_eps)).astype(jnp.float32)
    tp = bta.astype(jnp.float32)
    wp2 = lin(next(ks), H, (H, out_channels))
    bp2 = (jax.random.normal(next(ks), (1, out_channels)) * 0.01).astype(jnp.float32)

    return dict(w1=w1, b1=b1, s1=s1, t1=t1, w2=w2, b2=b2, osc=osc, osh=osh,
                wp1=wp1, bp1=bp1, sp=sp, tp=tp, wp2=wp2, bp2=bp2)


if __name__ == "__main__":
    in_channels, hidden, out_channels = 16, 32, 8
    num_layers = 3
    use_batch_norm = True
    N, E, G = 64, 256, 2

    key = jax.random.PRNGKey(0)
    k_x, k_e, k_p = jax.random.split(key, 3)

    x = jax.random.normal(k_x, (N, in_channels), jnp.float32)
    edge_index = jax.random.randint(k_e, (2, E), 0, N, dtype=jnp.int32)
    batch = jnp.concatenate([jnp.zeros(N // 2, jnp.int32), jnp.ones(N - N // 2, jnp.int32)])

    params = init_params(k_p, in_channels, hidden, out_channels, num_layers, use_batch_norm)

    out = gin_classic_forward(x, edge_index, batch, params, num_graphs=G)
    out = jax.block_until_ready(out)

    ref = reference_forward(x, edge_index, batch, params, G, in_channels)
    np.testing.assert_allclose(np.asarray(out), np.asarray(ref), rtol=1e-4, atol=1e-4)
    assert out.shape == (G, out_channels) and out.dtype == jnp.float32

    print("KERNEL_OK")
</pallas_src>

<mosaic_0001>
module attributes {stable_mosaic.version = 11 : i64} {
  func.func @_gin_fused_kernel(%arg0: i32, %arg1: memref<64x128xf32, #tpu.memory_space<any>>, %arg2: memref<64x64xbf16, #tpu.memory_space<vmem>>, %arg3: memref<2x64xf32, #tpu.memory_space<vmem>>, %arg4: memref<384x128xf32, #tpu.memory_space<vmem>>, %arg5: memref<8x128xf32, #tpu.memory_space<vmem>>, %arg6: memref<128x128xf32, #tpu.memory_space<vmem>>, %arg7: memref<8x128xf32, #tpu.memory_space<vmem>>, %arg8: memref<2x128xf32, #tpu.memory_space<vmem>>, %arg9: memref<64x128xf32, #tpu.memory_space<vmem>>, %arg10: memref<2x128xf32, #tpu.memory_space<vmem>>, %arg11: memref<!tpu.dma_semaphore, #tpu.memory_space<semaphore_mem>>) attributes {dimension_semantics = [#tpu.dimension_semantics<arbitrary>], iteration_bounds = array<i64: 3>, scalar_prefetch = 0 : i64, scratch_operands = 3 : i64, tpu.core_type = #tpu.core_type<tc>, window_params = [{}, {pipeline_mode = #tpu.pipeline_mode<synchronous>, transform_indices = @transform_1, window_bounds = array<i64: 64, 64>}, {pipeline_mode = #tpu.pipeline_mode<synchronous>, transform_indices = @transform_2, window_bounds = array<i64: 2, 64>}, {transform_indices = @transform_3, window_bounds = array<i64: 384, 128>}, {transform_indices = @transform_4, window_bounds = array<i64: 8, 128>}, {pipeline_mode = #tpu.pipeline_mode<synchronous>, transform_indices = @transform_5, window_bounds = array<i64: 128, 128>}, {pipeline_mode = #tpu.pipeline_mode<synchronous>, transform_indices = @transform_6, window_bounds = array<i64: 8, 128>}, {pipeline_mode = #tpu.pipeline_mode<synchronous>, transform_indices = @transform_7, window_bounds = array<i64: 2, 128>}]} {
    %c0_i32 = arith.constant 0 : i32
    %0 = arith.cmpi eq, %arg0, %c0_i32 : i32
    %1 = arith.extui %0 : i1 to i32
    %c0_i32_0 = arith.constant 0 : i32
    %2 = arith.cmpi ne, %1, %c0_i32_0 : i32
    scf.if %2 {
      tpu.enqueue_dma source(%arg1 : memref<64x128xf32, #tpu.memory_space<any>>) target(%arg9 : memref<64x128xf32, #tpu.memory_space<vmem>>) target_semaphore(%arg11 : memref<!tpu.dma_semaphore, #tpu.memory_space<semaphore_mem>>)
      tpu.wait_dma2 semaphore(%arg11 : memref<!tpu.dma_semaphore, #tpu.memory_space<semaphore_mem>>) src(%arg1 : memref<64x128xf32, #tpu.memory_space<any>>) dst(%arg9 : memref<64x128xf32, #tpu.memory_space<vmem>>)
      %cst_26 = arith.constant 0.000000e+00 : f32
      %31 = vector.broadcast %cst_26 : f32 to vector<2x128xf32>
      %c0_27 = arith.constant 0 : index
      %c0_28 = arith.constant 0 : index
      %32 = vector.load %arg10[%c0_27, %c0_28] : memref<2x128xf32, #tpu.memory_space<vmem>>, vector<2x128xf32>
      tpu.vector_store %arg10[%c0_27, %c0_28], %31 {strides = array<i32>} : memref<2x128xf32, #tpu.memory_space<vmem>>, vector<2x128xf32>,
    } else {
    }
    %c0 = arith.constant 0 : index
    %c0_1 = arith.constant 0 : index
    %3 = vector.load %arg2[%c0, %c0_1] : memref<64x64xbf16, #tpu.memory_space<vmem>>, vector<64x64xbf16>
    %4 = arith.extf %3 : vector<64x64xbf16> to vector<64x64xf32>
    %c0_2 = arith.constant 0 : index
    %c0_3 = arith.constant 0 : index
    %5 = vector.load %arg9[%c0_2, %c0_3] : memref<64x128xf32, #tpu.memory_space<vmem>>, vector<64x128xf32>
    %cst = arith.constant dense<0.000000e+00> : vector<64x128xf32>
    %6 = tpu.matmul %4, %5, %cst {dimension_numbers = #tpu.dot_dimension_numbers<[1], [0], [0], [1], [0, 0, 1, 1], [], []>} : vector<64x64xf32>, vector<64x128xf32>, vector<64x128xf32> -> vector<64x128xf32>
    %c0_4 = arith.constant 0 : index
    %c0_5 = arith.constant 0 : index
    %7 = vector.load %arg4[%c0_4, %c0_5] : memref<384x128xf32, #tpu.memory_space<vmem>>, vector<128x128xf32>
    %c128 = arith.constant 128 : index
    %c0_6 = arith.constant 0 : index
    %8 = vector.load %arg4[%c128, %c0_6] : memref<384x128xf32, #tpu.memory_space<vmem>>, vector<128x128xf32>
    %c256 = arith.constant 256 : index
    %c0_7 = arith.constant 0 : index
    %9 = vector.load %arg4[%c256, %c0_7] : memref<384x128xf32, #tpu.memory_space<vmem>>, vector<128x128xf32>
    %c0_8 = arith.constant 0 : index
    %c0_9 = arith.constant 0 : index
    %10 = vector.load %arg5[%c0_8, %c0_9] : memref<8x128xf32, #tpu.memory_space<vmem>>, vector<1x128xf32>
    %c1 = arith.constant 1 : index
    %c0_10 = arith.constant 0 : index
    %11 = vector.load %arg5[%c1, %c0_10] : memref<8x128xf32, #tpu.memory_space<vmem>>, vector<1x128xf32>
    %c2 = arith.constant 2 : index
    %c0_11 = arith.constant 0 : index
    %12 = vector.load %arg5[%c2, %c0_11] : memref<8x128xf32, #tpu.memory_space<vmem>>, vector<1x128xf32>
    %cst_12 = arith.constant dense<0.000000e+00> : vector<64x128xf32>
    %13 = tpu.matmul %6, %7, %cst_12 {dimension_numbers = #tpu.dot_dimension_numbers<[1], [0], [0], [1], [0, 0, 1, 1], [], []>} : vector<64x128xf32>, vector<128x128xf32>, vector<64x128xf32> -> vector<64x128xf32>
    %14 = vector.broadcast %10 : vector<1x128xf32> to vector<64x128xf32>
    %15 = arith.addf %13, %14 : vector<64x128xf32>
    %cst_13 = arith.constant 0.000000e+00 : f32
    %16 = vector.broadcast %cst_13 : f32 to vector<64x128xf32>
    %17 = arith.maximumf %15, %16 : vector<64x128xf32>
    %cst_14 = arith.constant dense<0.000000e+00> : vector<64x128xf32>
    %18 = tpu.matmul %17, %8, %cst_14 {dimension_numbers = #tpu.dot_dimension_numbers<[1], [0], [0], [1], [0, 0, 1, 1], [], []>} : vector<64x128xf32>, vector<128x128xf32>, vector<64x128xf32> -> vector<64x128xf32>
    %19 = vector.broadcast %11 : vector<1x128xf32> to vector<64x128xf32>
    %20 = arith.addf %18, %19 : vector<64x128xf32>
    %c0_15 = arith.constant 0 : index
    %c0_16 = arith.constant 0 : index
    %21 = vector.load %arg9[%c0_15, %c0_16] : memref<64x128xf32, #tpu.memory_space<vmem>>, vector<64x128xf32>
    tpu.vector_store %arg9[%c0_15, %c0_16], %20 {strides = array<i32>} : memref<64x128xf32, #tpu.memory_space<vmem>>, vector<64x128xf32>,
    %c0_17 = arith.constant 0 : index
    %c0_18 = arith.constant 0 : index
    %22 = vector.load %arg3[%c0_17, %c0_18] : memref<2x64xf32, #tpu.memory_space<vmem>>, vector<2x64xf32>
    %cst_19 = arith.constant dense<0.000000e+00> : vector<2x128xf32>
    %23 = tpu.matmul %22, %20, %cst_19 {dimension_numbers = #tpu.dot_dimension_numbers<[1], [0], [0], [1], [0, 0, 1, 1], [], []>} : vector<2x64xf32>, vector<64x128xf32>, vector<2x128xf32> -> vector<2x128xf32>
    %c0_20 = arith.constant 0 : index
    %c0_21 = arith.constant 0 : index
    %24 = vector.load %arg10[%c0_20, %c0_21] : memref<2x128xf32, #tpu.memory_space<vmem>>, vector<2x128xf32>
    %cst_22 = arith.constant dense<0.000000e+00> : vector<2x128xf32>
    %25 = tpu.matmul %23, %9, %cst_22 {dimension_numbers = #tpu.dot_dimension_numbers<[1], [0], [0], [1], [0, 0, 1, 1], [], []>} : vector<2x128xf32>, vector<128x128xf32>, vector<2x128xf32> -> vector<2x128xf32>
    %26 = arith.addf %24, %25 : vector<2x128xf32>
    %c0_23 = arith.constant 0 : index
    %c0_24 = arith.constant 0 : index
    %27 = vector.load %arg10[%c0_23, %c0_24] : memref<2x128xf32, #tpu.memory_space<vmem>>, vector<2x128xf32>
    tpu.vector_store %arg10[%c0_23, %c0_24], %26 {strides = array<i32>} : memref<2x128xf32, #tpu.memory_space<vmem>>, vector<2x128xf32>,
    %c2_i32 = arith.constant 2 : i32
    %28 = arith.cmpi eq, %arg0, %c2_i32 : i32
    %29 = arith.extui %28 : i1 to i32
    %c0_i32_25 = arith.constant 0 : i32
    %30 = arith.cmpi ne, %29, %c0_i32_25 : i32
    scf.if %30 {
      %c0_26 = arith.constant 0 : index
      %c0_27 = arith.constant 0 : index
      %31 = vector.load %arg10[%c0_26, %c0_27] : memref<2x128xf32, #tpu.memory_space<vmem>>, vector<2x128xf32>
      %32 = vector.broadcast %12 : vector<1x128xf32> to vector<2x128xf32>
      %33 = arith.addf %31, %32 : vector<2x128xf32>
      %cst_28 = arith.constant 0.000000e+00 : f32
      %34 = vector.broadcast %cst_28 : f32 to vector<2x128xf32>
      %35 = arith.maximumf %33, %34 : vector<2x128xf32>
      %c0_29 = arith.constant 0 : index
      %c0_30 = arith.constant 0 : index
      %36 = vector.load %arg6[%c0_29, %c0_30] : memref<128x128xf32, #tpu.memory_space<vmem>>, vector<128x128xf32>
      %cst_31 = arith.constant dense<0.000000e+00> : vector<2x128xf32>
      %37 = tpu.matmul %35, %36, %cst_31 {dimension_numbers = #tpu.dot_dimension_numbers<[1], [0], [0], [1], [0, 0, 1, 1], [], []>} : vector<2x128xf32>, vector<128x128xf32>, vector<2x128xf32> -> vector<2x128xf32>
      %c0_32 = arith.constant 0 : index
      %c0_33 = arith.constant 0 : index
      %38 = vector.load %arg7[%c0_32, %c0_33] : memref<8x128xf32, #tpu.memory_space<vmem>>, vector<1x128xf32>
      %39 = vector.broadcast %38 : vector<1x128xf32> to vector<2x128xf32>
      %40 = arith.addf %37, %39 : vector<2x128xf32>
      %c0_34 = arith.constant 0 : index
      %c0_35 = arith.constant 0 : index
      %41 = vector.load %arg8[%c0_34, %c0_35] : memref<2x128xf32, #tpu.memory_space<vmem>>, vector<2x128xf32>
      tpu.vector_store %arg8[%c0_34, %c0_35], %40 {strides = array<i32>} : memref<2x128xf32, #tpu.memory_space<vmem>>, vector<2x128xf32>,
    } else {
    }
    return
  }
  func.func @transform_1(%arg0: i32) -> (i32, i32) {
    %c0_i32 = arith.constant 0 : i32
    %c0_i32_0 = arith.constant 0 : i32
    %c0_i32_1 = arith.constant 0 : i32
    return %c0_i32, %c0_i32_0 : i32, i32
  }
  func.func @transform_2(%arg0: i32) -> (i32, i32) {
    %c0_i32 = arith.constant 0 : i32
    %c0_i32_0 = arith.constant 0 : i32
    %c0_i32_1 = arith.constant 0 : i32
    return %c0_i32, %c0_i32_0 : i32, i32
  }
  func.func @transform_3(%arg0: i32) -> (i32, i32) {
    %c0_i32 = arith.constant 0 : i32
    %c0_i32_0 = arith.constant 0 : i32
    return %arg0, %c0_i32 : i32, i32
  }
  func.func @transform_4(%arg0: i32) -> (i32, i32) {
    %c0_i32 = arith.constant 0 : i32
    %c0_i32_0 = arith.constant 0 : i32
    return %arg0, %c0_i32 : i32, i32
  }
  func.func @transform_5(%arg0: i32) -> (i32, i32) {
    %c0_i32 = arith.constant 0 : i32
    %c0_i32_0 = arith.constant 0 : i32
    %c0_i32_1 = arith.constant 0 : i32
    return %c0_i32, %c0_i32_0 : i32, i32
  }
  func.func @transform_6(%arg0: i32) -> (i32, i32) {
    %c0_i32 = arith.constant 0 : i32
    %c0_i32_0 = arith.constant 0 : i32
    %c0_i32_1 = arith.constant 0 : i32
    return %c0_i32, %c0_i32_0 : i32, i32
  }
  func.func @transform_7(%arg0: i32) -> (i32, i32) {
    %c0_i32 = arith.constant 0 : i32
    %c0_i32_0 = arith.constant 0 : i32
    %c0_i32_1 = arith.constant 0 : i32
    return %c0_i32, %c0_i32_0 : i32, i32
  }
}

</mosaic_0001>

<bundles_post_ra>
// kernel: tpu_custom_call.1
= control target key start
LH: loop header
LB: loop body
LE: loop exit
PB: predicated region body
PF: predicated region fallthrough
CT: control target
= control target key end

     0   :  { %s2139_s0 = inlined_call_operand.hbm [shape: f32[64,128], index: 0, kind: input, shape index: {}]   ;;  %s2140_s1 = inlined_call_operand.hbm [shape: bf16[64,64], index: 1, kind: input, shape index: {}]   ;;  %s2141_s2 = inlined_call_operand.vmem [shape: f32[2,64], index: 2, kind: input, shape index: {}]   ;;  %s2142_s3 = inlined_call_operand.hbm [shape: f32[1152,128], index: 3, kind: input, shape index: {}]   ;;  %s2143_s4 = inlined_call_operand.hbm [shape: f32[24,128], index: 4, kind: input, shape index: {}]   ;;  %s2144_s5 = inlined_call_operand.hbm [shape: f32[128,128], index: 5, kind: input, shape index: {}]   ;;  %s2145_s6 = inlined_call_operand.vmem [shape: f32[8,128], index: 6, kind: input, shape index: {}]   ;;  %s2146_s7 = inlined_call_operand.hbm [shape: f32[2,128], index: 7, kind: output, shape index: {}]  }
   0x1   :  { %2151 = sst [smem:[#allocation23_spill]] %s2140_s1 }
   0x2   :  { %2152 = sst [smem:[#allocation24_spill]] %s2142_s3 }
   0x3   :  { %12 = vsyncpa [#allocation6], 0 }
   0x4   :  { %13 = vsyncpa [#allocation9], 0 }
   0x5   :  { %15 = vsyncpa [#allocation9 + $0x1], 0 }
   0x6   :  { %16 = vsyncpa [#allocation12], 0 }
   0x7   :  { %17 = vsyncpa [#allocation7], 0  ;;  %s1842_s24 = smov 0   ;;  %s1844_s25 = smov 0  }
   0x8   :  { %s1846_s26 = smov 0   ;;  %s1848_s27 = smov 0  }
   0x9 LB: > { %s1863_s28 = sadd.s32 1, %s1785_s27   ;;  %s72_s29 = sadd.s32 1, %s1781_s26  ;;  %s1785_s27 = sphi %s1848_s27, %s2171_s27   ;;  %s1781_s26 = sphi %s1846_s26, %s2170_s26   ;;  %s1777_s25 = sphi %s1844_s25, %s2169_s25   ;;  %s1773_s24 = sphi %s1842_s24, %s2168_s24  }
   0xa   : > { %s69_s30 = ssub.s32 %s1785_s27, %s1863_s28  ;;  %p79_p0 = scmp.ne.s32.totalorder %s1781_s26, %s1777_s25 }
   0xb   : > { %p70_p1 = scmp.eq.s32.totalorder %s69_s30, 0  ;;  %p80_p2 = scmp.eq.s32.totalorder %s1785_s27, 0 }
   0xc   : > { %p1535_p4 = scmp.lt.s32.totalorder %s1785_s27, 3  ;;  %s230_s9 = sand.u32 1, %s1785_s27  }
   0xd   : > { %s1872_s8 = scalar_select %p70_p1, %s1781_s26, %s72_s29  }
   0xe   : > { %p81_p3 = por %p80_p2, %p79_p0  ;;  %s232_s10 = sand.u32 1, %s1781_s26  }
   0xf   : > { %s1501_s11 = smul.u32 384, %s232_s10  ;;  %s2154_s3 = sld [smem:[#allocation24_spill]] }
  0x10   : > { %p1879_p5 = pnand %p1535_p4, %p81_p3  ;;  %s1169_s13 = smul.u32 6144, %s1785_s27 }
  0x11   : > { %s234_s17 = scalar_lea.vmem [#allocation8], %s1501_s11  ;;  %s1891_s19 = scalar_lea.sflag [#allocation9], %s230_s9 }
  0x12   : > { %s241_s18 = sshll.u32 %s234_s17, 4  ;;  %p2148_p7 = pneg %p1879_p5  ;;  %s1889_s18 = int_to_ptr.vmem [resolvable:$true] %s241_s18 }
  0x15   : > { %s1887_s16 = scalar_lea.hbm %s2154_s3, %s1169_s13  ;;  %s1590_s23 = scalar_lea.hbm %s2154_s3, 18432 }
  0x16   : > { %s1585_s20 = scalar_lea.hbm %s1887_s16, 6144  ;;  %p1591_p10 = scmp.lt.s32.totalorder %s1887_s16, %s2154_s3 }
  0x17   : > { %p1586_p6 = scmp.ne.s32.totalorder %s1887_s16, %s1585_s20  ;;  %p1592_p11 = scmp.lt.s32.totalorder %s1590_s23, %s1585_s20 }
  0x19   : > { %p1588_p8 = pnand %p2148_p7, %p1586_p6  ;;  %p1593_p12 = por %p1592_p11, %p1591_p10 }
  0x1b   : > { %p1589_p9 = pneg %p1588_p8 }
  0x1d   : > { %p1594_p13 = pnand %p1593_p12, %p1589_p9 }
  0x1f   : > { %1597 = shalt.err (!%p1594_p13)
}
  0x20   : > { %s1598_s9 = scalar_lea.vmem %s1889_s18, 6144  ;;  %s1787_s11 = smov [#allocation8]  }
  0x21   : > { %p1599_p0 = scmp.ne.s32.totalorder %s1889_s18, %s1598_s9  ;;  %s1603_s13 = sshll.u32 %s1787_s11, 4  ;;  %s1604_s13 = int_to_ptr.vmem [resolvable:$false] %s1603_s13 }
  0x22   : > { %s1605_s14 = scalar_lea.vmem %s1604_s13, 12288  ;;  %p1606_p3 = scmp.lt.s32.totalorder %s1889_s18, %s1604_s13 }
  0x23   : > { %p1601_p1 = pnand %p1599_p0, %p2148_p7  ;;  %p1607_p4 = scmp.lt.s32.totalorder %s1605_s14, %s1598_s9 }
  0x25   : > { %p1602_p2 = pneg %p1601_p1  ;;  %p1608_p6 = por %p1607_p4, %p1606_p3 }
  0x27   : > { %p1609_p8 = pnand %p1608_p6, %p1602_p2 }
  0x29   : > { %1612 = shalt.err (!%p1609_p8)
}
  0x2a   : > { %s1788_s15 = smov 128   ;;  %s1789_s17 = smov 8  }
  0x2b   : > { %1529 = dma.hbm_to_vmem [thread:$0]  (!%p1879_p5), %s1887_s16, 6144, %s1889_s18, %s1891_s19, %s1788_s15, %s1788_s15, %s1789_s17  }
  0x2c   : > { %s1922_s20 = sadd.s32 4294967295, %s1785_s27   ;;  %p85_p9 = scmp.ne.s32.totalorder %s1777_s25, %s1773_s24 }
  0x2d   : > { %p2147_p10 = scmp.eq.s32.totalorder %s1922_s20, 0  ;;  %p1138_p11 = scmp.ge.s32.totalorder %s1785_s27, 1 }
  0x2e   : > { %p185_p12 = scmp.lt.s32.totalorder %s1785_s27, 4  ;;  %s1790_s16 = smov [#allocation5]  }
  0x2f   : > { %p1932_p0 = por %p2147_p10, %p85_p9  ;;  %s197_s18 = sshll.u32 %s1790_s16, 4  ;;  %s198_s18 = int_to_ptr.vmem [resolvable:$true] %s197_s18 }
  0x30   : > { %p1936_p1 = pnand %p1138_p11, %p185_p12  ;;  %s1944_s24 = sshll.u32 %s232_s10, 3 }
  0x31   : > { %s2155_s21 = scalar_select %p1932_p0, 1, 0 }
  0x32   : > { %s2156_s22 = scalar_select %p1936_p1, 1, 0 }
  0x33   : > { %p1519_p2 = pneg %p1936_p1  ;;  %s1791_s29 = smov [#allocation11]  }
  0x34   : > { %s213_s30 = sshll.u32 %s1791_s29, 4  ;;  %s1144_s9 = sshll.u32 %s1785_s27, 7  ;;  %s214_s30 = int_to_ptr.vmem [resolvable:$true] %s213_s30 }
  0x35   : > { %p1948_p3 = pnand %p1519_p2, %p2147_p10  ;;  %s1624_s11 = scalar_lea.vmem %s198_s18, 512 }
  0x36   : > { %p1625_p6 = scmp.ne.s32.totalorder %s198_s18, %s1624_s11  ;;  %p1632_p11 = scmp.lt.s32.totalorder %s198_s18, %s198_s18 }
  0x37   : > { %p1615_p4 = pneg %p1948_p3  ;;  %p1633_p12 = scmp.lt.s32.totalorder %s1624_s11, %s1624_s11 }
  0x39   : > { %p1627_p8 = pnand %p1625_p6, %p1615_p4  ;;  %p1634_p2 = por %p1633_p12, %p1632_p11 }
  0x3b   : > { %p1628_p9 = pneg %p1627_p8 }
  0x3d   : > { %p1635_p13 = pnand %p1634_p2, %p1628_p9 }
  0x3f   : > { %1638 = shalt.err (!%p1635_p13)
}
  0x40   : > { %s1792_s10 = smov 64   ;;  %s1793_s13 = smov 4  }
  0x41   : > { %s2158_s1 = sld [smem:[#allocation23_spill]]  ;;  %s1650_s16 = scalar_lea.vmem %s214_s30, 2048 }
  0x42   : > { %p1651_p10 = scmp.ne.s32.totalorder %s214_s30, %s1650_s16  ;;  %p1658_p7 = scmp.lt.s32.totalorder %s214_s30, %s214_s30 }
  0x43   : > { %p1659_p0 = scmp.lt.s32.totalorder %s1650_s16, %s1650_s16 }
  0x44   : > { %p1653_p6 = pnand %p1651_p10, %p1615_p4 }
  0x45   : > { %p1660_p11 = por %p1659_p0, %p1658_p7 }
  0x46   : > { %p1654_p8 = pneg %p1653_p6 }
  0x47   : > { %1522 = dma.hbm_to_vmem [thread:$0]  (!%p1948_p3), %s2158_s1, 512, %s198_s18, [#allocation6], %s1792_s10, %s1792_s10, %s1793_s13  }
  0x48   : > { %p1661_p9 = pnand %p1660_p11, %p1654_p8 }
  0x4a   : > { %1664 = shalt.err (!%p1661_p9)
}
  0x4b   : > { %1525 = dma.hbm_to_vmem [thread:$0]  (!%p1948_p3), %s2144_s5, 2048, %s214_s30, [#allocation12], %s1788_s15, %s1788_s15, %s1789_s17  }
  0x4c   : > { %s260_s13 = scalar_lea.hbm %s2143_s4, %s1144_s9  ;;  %s255_s14 = scalar_lea.vmem [#allocation10], %s1944_s24 }
  0x4d   : > { %s262_s27 = sshll.u32 %s255_s14, 4  ;;  %s1665_s16 = scalar_lea.hbm %s260_s13, 128  ;;  %s263_s27 = int_to_ptr.vmem [resolvable:$true] %s262_s27 }
  0x4e   : > { %p1666_p7 = scmp.ne.s32.totalorder %s260_s13, %s1665_s16  ;;  %p2159_p10 = pneg %p1879_p5 }
  0x4f   : > { %s1670_s29 = scalar_lea.hbm %s2143_s4, 384  ;;  %p1671_p3 = scmp.lt.s32.totalorder %s260_s13, %s2143_s4 }
  0x50   : > { %p1668_p13 = pnand %p1666_p7, %p2159_p10  ;;  %p1672_p4 = scmp.lt.s32.totalorder %s1670_s29, %s1665_s16 }
  0x52   : > { %p1669_p0 = pneg %p1668_p13  ;;  %p1673_p12 = por %p1672_p4, %p1671_p3 }
  0x54   : > { %p1674_p2 = pnand %p1673_p12, %p1669_p0 }
  0x56   : > { %1677 = shalt.err (!%p1674_p2)
}
  0x57   : > { %s1678_s15 = scalar_lea.vmem %s263_s27, 128  ;;  %p2160_p8 = pmov %p2159_p10 }
  0x58   : > { %p1679_p6 = scmp.ne.s32.totalorder %s263_s27, %s1678_s15  ;;  %s1794_s17 = smov [#allocation10]  }
  0x59   : > { %s1683_s24 = sshll.u32 %s1794_s17, 4  ;;  %s1684_s24 = int_to_ptr.vmem [resolvable:$false] %s1683_s24 }
  0x5a   : > { %p1681_p11 = pnand %p1679_p6, %p2160_p8  ;;  %s1685_s1 = scalar_lea.vmem %s1684_s24, 256 }
  0x5b   : > { %p1686_p7 = scmp.lt.s32.totalorder %s263_s27, %s1684_s24  ;;  %p1687_p10 = scmp.lt.s32.totalorder %s1685_s1, %s1678_s15 }
  0x5c   : > { %p1682_p9 = pneg %p1681_p11 }
  0x5d   : > { %p1688_p13 = por %p1687_p10, %p1686_p7 }
  0x5f   : > { %p1689_p1 = pnand %p1688_p13, %p1682_p9 }
  0x61   : > { %1692 = shalt.err (!%p1689_p1)
}
  0x62   : > { %1532 = dma.hbm_to_vmem [thread:$0]  (!%p1879_p5), %s260_s13, 128, %s263_s27, %s1891_s19  }
  0x63   : > { %p2161_p0 = scmp.ne.s32.totalorder %s2156_s22, 0 }
  0x64   : > { %p2162_p3 = scmp.eq.s32.totalorder (!%p2161_p0), %s1922_s20, 0 }
  0x65   : > { %271 = sbr.rel (%p2161_p0) target bundleno = 1398 (0x576), region = 44 }
  0x6a   : > { %1754 = dma.done.wait (%p2162_p3), [#allocation6], 512   ;;  %p2163_p4 = pmov %p2162_p3 }
  0x6b   : > { %s277_s3 = sand.u32 1, %s1922_s20   ;;  %s279_s30 = sand.u32 1, %s1777_s25  }
  0x6c   : > { %1756 = vsyncadd (%p2163_p4), [#allocation6], 4294966784  ;;  %s1502_s9 = smul.u32 384, %s279_s30  ;;  %s278_s18 = scalar_lea.sflag [#allocation9], %s277_s3 }
  0x6d   : > { %p2164_p1 = scmp.ne.s32.totalorder %s2155_s21, 0 }
  0x6e   : > { %s2001_s10 = scalar_lea.vmem [#allocation8], %s1502_s9 }
  0x6f   : > { %1758 = dma.done.wait (%p2164_p1), %s278_s18, 6272  }
  0x70   : > { %1760 = vsyncadd (%p2164_p1), %s278_s18, 4294961024  ;;  %s1147_s12 = sshll.u32 %s279_s30, 3  ;;  %p2165_p5 = pmov %p2162_p3 }
  0x71   : > { %s2007_s19 = scalar_lea.vmem [#allocation10], %s1147_s12 }
  0x72   : > { %1762 = dma.done.wait (%p2165_p5), [#allocation12], 2048   ;;  %p2166_p12 = pmov %p2162_p3 }
  0x73   : > { %p2167_p2 = scmp.ne.s32.totalorder %s1922_s20, 0 }
  0x74   : > { %1764 = vsyncadd (%p2166_p12), [#allocation12], 4294965248  ;;  %s1795_s22 = smov (!%p2167_p2), [#allocation2]  }
  0x75   : > { %327 = sbr.rel (%p2167_p2) target bundleno = 130 (0x82), region = 64  ;;  %s335_s13 = sshll.u32 (!%p2167_p2), %s1795_s22, 4  ;;  %s336_s13 = int_to_ptr.vmem [resolvable:$true] %s335_s13 }
  0x76   : > { %s1701_s14 = scalar_lea.vmem (!%p2167_p2), %s336_s13, 1024  ;;  %p1706_p8 = scmp.lt.s32.totalorder (!%p2167_p2), %s336_s13, %s336_s13 }
  0x77   : > { %p1702_p6 = scmp.ne.s32.totalorder (!%p2167_p2), %s336_s13, %s1701_s14  ;;  %p1707_p11 = scmp.lt.s32.totalorder (!%p2167_p2), %s1701_s14, %s1701_s14 }
  0x79   : > { %p1708_p9 = por (!%p2167_p2), %p1707_p11, %p1706_p8 }
  0x7b   : > { %p1709_p7 = pnand %p1708_p9, %p1702_p6 }
  0x7d   : > { %1712 = shalt.err (!%p1709_p7)  }
  0x7e   : > { %338 = dma.hbm_to_vmem [thread:$0]  %s2139_s0, 1024, %s336_s13, [#allocation4] }
  0x7f   : > { %1765 = dma.done.wait [#allocation4], 1024 }
  0x80   : > { %1766 = vsyncadd [#allocation4], 4294966272  ;;  %v1796_v0 = vmov 0.0  }
  0x81   : > { %342 = vst [vmem:[#allocation3] sm:$0x3] %v1796_v0 }
  0x82 PF: > { %v366_v1 = vld [vmem:[#allocation2 + $0x38] sm:$0xff]  ;;  %v365_v2 = vld [vmem:[#allocation2 + $0x30] sm:$0xff]  ;;  %v364_v3 = vld [vmem:[#allocation2 + $0x28] sm:$0xff]  ;;  %vm367_vm0 = vcmask 523264   ;;  %vm1798_vm1 = vmmov 0   ;;  %p1161_p10 = scmp.ne.s32.totalorder %s1922_s20, 2 }
  0x83   : > { %1296 = vmatprep.subr.mxu1 %v366_v1  ;;  %v1171_v4 = vld [vmem:[#allocation5] sm:$0xff]   ;;  %v362_v8 = vld [vmem:[#allocation2 + $0x18] sm:$0xff]  ;;  %v361_v9 = vld [vmem:[#allocation2 + $0x10] sm:$0xff] }
  0x84   : > { %1297 = vmatpush3.msra.mxu1 %v366_v1  ;;  %v1172_v5 = vunpack.c.l.bf16 %v1171_v4  ;;  %v363_v6 = vld [vmem:[#allocation2 + $0x20] sm:$0xff]  ;;  %v360_v10 = vld [vmem:[#allocation2 + $0x8] sm:$0xff]  ;;  %v1173_v13 = vunpack.c.h.bf16 %v1171_v4  ;;  %v1187_v16 = vld [vmem:[#allocation5 + $0x10] sm:$0xff]  }
  0x85   : > { %1298 = vmatprep.subr.mxu1 %v365_v2  ;;  %v2019_v7 = vld [vmem:[%s2007_s19 + $0x2] ss:$0 sm:$0xff]  ;;  %v512_v15 = vld [vmem:[%s2001_s10 + $0x78] sm:$0xff]  ;;  %v511_v17 = vld [vmem:[%s2001_s10 + $0x70] sm:$0xff]  ;;  %v1180_v19 = vunpack.c.l.bf16 %v1187_v16  ;;  %v1181_v23 = vunpack.c.h.bf16 %v1187_v16 }
  0x86   : > { %1299 = vmatpush3.msra.mxu1 %v365_v2  ;;  %1312 = vmatprep.mubr.msk.f32.mxu1 %vm367_vm0, %v1172_v5  ;;  %v1186_v11 = vld [vmem:[#allocation5 + $0x8] sm:$0xff]   ;;  %v359_v12 = vld [vmem:[#allocation2] sm:$0xff]  ;;  %v507_v26 = vld [vmem:[%s2001_s10 + $0x50] sm:$0xff] }
  0x87   : > { %1300 = vmatprep.subr.mxu1 %v364_v3  ;;  %v1176_v14 = vunpack.c.l.bf16 %v1186_v11  ;;  %v1177_v18 = vunpack.c.h.bf16 %v1186_v11  ;;  %v510_v20 = vld [vmem:[%s2001_s10 + $0x68] sm:$0xff]  ;;  %v1188_v21 = vld [vmem:[#allocation5 + $0x18] sm:$0xff]   ;;  %v509_v22 = vld [vmem:[%s2001_s10 + $0x60] sm:$0xff] }
  0x88   : > { %1301 = vmatpush3.msra.mxu1 %v364_v3  ;;  %v1184_v24 = vunpack.c.l.bf16 %v1188_v21  ;;  %v508_v25 = vld [vmem:[%s2001_s10 + $0x58] sm:$0xff]  ;;  %v1185_v27 = vunpack.c.h.bf16 %v1188_v21  ;;  %v506_v28 = vld [vmem:[%s2001_s10 + $0x48] sm:$0xff]  ;;  %v505_v29 = vld [vmem:[%s2001_s10 + $0x40] sm:$0xff] }
  0x89   : > { %1302 = vmatprep.subr.mxu1 %v363_v6  ;;  %v504_v30 = vld [vmem:[%s2001_s10 + $0x38] sm:$0xff]  ;;  %v503_v31 = vld [vmem:[%s2001_s10 + $0x30] sm:$0xff]  ;;  %v502_v32 = vld [vmem:[%s2001_s10 + $0x28] sm:$0xff] }
  0x8a   : > { %1303 = vmatpush3.msra.mxu1 %v363_v6  ;;  %v501_v33 = vld [vmem:[%s2001_s10 + $0x20] sm:$0xff]  ;;  %v500_v34 = vld [vmem:[%s2001_s10 + $0x18] sm:$0xff]  ;;  %v499_v35 = vld [vmem:[%s2001_s10 + $0x10] sm:$0xff] }
  0x8b   : > { %1304 = vmatprep.subr.mxu1 %v362_v8  ;;  %v498_v36 = vld [vmem:[%s2001_s10 + $0x8] sm:$0xff]  ;;  %v497_v37 = vld [vmem:[%s2001_s10] sm:$0xff]  ;;  %v528_v38 = vld [vmem:[%s2001_s10 + $0xf8] sm:$0xff] }
  0x8c   : > { %1305 = vmatpush3.msra.mxu1 %v362_v8  ;;  %v527_v39 = vld [vmem:[%s2001_s10 + $0xf0] sm:$0xff]  ;;  %1368 = vmatprep.subr.mxu0 %v528_v38  ;;  %v526_v40 = vld [vmem:[%s2001_s10 + $0xe8] sm:$0xff]  ;;  %v525_v41 = vld [vmem:[%s2001_s10 + $0xe0] sm:$0xff] }
  0x8d   : > { %1306 = vmatprep.subr.mxu1 %v361_v9  ;;  %1369 = vmatpush3.msra.mxu0 %v528_v38  ;;  %v524_v42 = vld [vmem:[%s2001_s10 + $0xd8] sm:$0xff]  ;;  %v523_v43 = vld [vmem:[%s2001_s10 + $0xd0] sm:$0xff]  ;;  %v522_v44 = vld [vmem:[%s2001_s10 + $0xc8] sm:$0xff] }
  0x8e   : > { %1307 = vmatpush3.msra.mxu1 %v361_v9  ;;  %1370 = vmatprep.subr.mxu0 %v527_v39  ;;  %v521_v45 = vld [vmem:[%s2001_s10 + $0xc0] sm:$0xff]  ;;  %v520_v46 = vld [vmem:[%s2001_s10 + $0xb8] sm:$0xff]  ;;  %v519_v47 = vld [vmem:[%s2001_s10 + $0xb0] sm:$0xff] }
  0x8f   : > { %1308 = vmatprep.subr.mxu1 %v360_v10  ;;  %1371 = vmatpush3.msra.mxu0 %v527_v39  ;;  %v518_v48 = vld [vmem:[%s2001_s10 + $0xa8] sm:$0xff]  ;;  %v517_v49 = vld [vmem:[%s2001_s10 + $0xa0] sm:$0xff]  ;;  %v516_v58 = vld [vmem:[%s2001_s10 + $0x98] sm:$0xff] }
  0x90   : > { %1309 = vmatpush3.msra.mxu1 %v360_v10  ;;  %1372 = vmatprep.subr.mxu0 %v526_v40  ;;  %v515_v59 = vld [vmem:[%s2001_s10 + $0x90] sm:$0xff]  ;;  %v514_v60 = vld [vmem:[%s2001_s10 + $0x88] sm:$0xff]  ;;  %v513_v61 = vld [vmem:[%s2001_s10 + $0x80] sm:$0xff] }
  0x91   : > { %1310 = vmatprep.subr.mxu1 %v359_v12  ;;  %1373 = vmatpush3.msra.mxu0 %v526_v40  ;;  %v1158_v62 = vld [vmem:[%s2007_s19] ss:$0 sm:$0xff]  ;;  %v531_v38 = vld [vmem:[%s2001_s10 + $0x110] sm:$0xff]  ;;  %v1159_v40 = vld [vmem:[%s2007_s19 + $0x1] ss:$0 sm:$0xff] }
  0x92   : > { %1311 = vmatpush3.msra.mxu1 %v359_v12  ;;  %1374 = vmatprep.subr.mxu0 %v525_v41  ;;  %v530_v39 = vld [vmem:[%s2001_s10 + $0x108] sm:$0xff] }
  0x93   : > { %1313 = vmatmul.mubr.msk.f32.vlgmr.msra.gmra.mxu1 %vm367_vm0, %v1173_v13  ;;  %1324 = vmatprep.subr.mxu1 %v512_v15 }
  0x94   : > { %1315 = vmatprep.mubr.msk.f32.mxu1 %vm367_vm0, %v1176_v14  ;;  %1325 = vmatpush3.msra.mxu1 %v512_v15 }
  0x95   : > { %1326 = vmatprep.subr.mxu1 %v511_v17  ;;  %1375 = vmatpush3.msra.mxu0 %v525_v41 }
  0x96   : > { %1327 = vmatpush3.msra.mxu1 %v511_v17  ;;  %1376 = vmatprep.subr.mxu0 %v524_v42 }
  0x97   : > { %1316 = vmatmul.mubr.msk.f32.gmra.mxu1 %vm367_vm0, %v1177_v18  ;;  %1328 = vmatprep.subr.mxu1 %v510_v20 }
  0x98   : > { %1318 = vmatprep.mubr.msk.f32.mxu1 %vm367_vm0, %v1180_v19  ;;  %1329 = vmatpush3.msra.mxu1 %v510_v20 }
  0x99   : > { %1330 = vmatprep.subr.mxu1 %v509_v22  ;;  %1377 = vmatpush3.msra.mxu0 %v524_v42 }
  0x9a   : > { %1331 = vmatpush3.msra.mxu1 %v509_v22  ;;  %1378 = vmatprep.subr.mxu0 %v523_v43 }
  0x9b   : > { %1319 = vmatmul.mubr.msk.f32.gmra.mxu1 %vm367_vm0, %v1181_v23  ;;  %1332 = vmatprep.subr.mxu1 %v508_v25 }
  0x9c   : > { %1321 = vmatprep.mubr.msk.f32.mxu1 %vm367_vm0, %v1184_v24  ;;  %1333 = vmatpush3.msra.mxu1 %v508_v25  ;;  %v1797_v24 = vmov 0.0   ;;  %v544_v25 = vld [vmem:[%s2001_s10 + $0x178] sm:$0xff] }
  0x9d   : > { %1334 = vmatprep.subr.mxu1 %v507_v26  ;;  %1379 = vmatpush3.msra.mxu0 %v523_v43 }
  0x9e   : > { %1335 = vmatpush3.msra.mxu1 %v507_v26  ;;  %1380 = vmatprep.subr.mxu0 %v522_v44  ;;  %v543_v26 = vld [vmem:[%s2001_s10 + $0x170] sm:$0xff] }
  0x9f   : > { %1322 = vmatmul.mubr.msk.f32.gmra.mxu1 %vm367_vm0, %v1185_v27  ;;  %1336 = vmatprep.subr.mxu1 %v506_v28  ;;  %v542_v27 = vld [vmem:[%s2001_s10 + $0x168] sm:$0xff] }
  0xa0   : > { %1337 = vmatpush3.msra.mxu1 %v506_v28  ;;  %1381 = vmatpush3.msra.mxu0 %v522_v44  ;;  %v541_v28 = vld [vmem:[%s2001_s10 + $0x160] sm:$0xff] }
  0xa1   : > { %1338 = vmatprep.subr.mxu1 %v505_v29  ;;  %1382 = vmatprep.subr.mxu0 %v521_v45 }
  0xa2   : > { %1339 = vmatpush3.msra.mxu1 %v505_v29  ;;  %1383 = vmatpush3.msra.mxu0 %v521_v45  ;;  %v540_v29 = vld [vmem:[%s2001_s10 + $0x158] sm:$0xff] }
  0xa3   : > { %1340 = vmatprep.subr.mxu1 %v504_v30  ;;  %1384 = vmatprep.subr.mxu0 %v520_v46 }
  0xa4   : > { %1341 = vmatpush3.msra.mxu1 %v504_v30  ;;  %1385 = vmatpush3.msra.mxu0 %v520_v46  ;;  %v539_v30 = vld [vmem:[%s2001_s10 + $0x150] sm:$0xff] }
  0xa5   : > { %1342 = vmatprep.subr.mxu1 %v503_v31  ;;  %1386 = vmatprep.subr.mxu0 %v519_v47 }
  0xa6   : > { %1343 = vmatpush3.msra.mxu1 %v503_v31  ;;  %1387 = vmatpush3.msra.mxu0 %v519_v47  ;;  %v538_v31 = vld [vmem:[%s2001_s10 + $0x148] sm:$0xff] }
  0xa7   : > { %1344 = vmatprep.subr.mxu1 %v502_v32  ;;  %1388 = vmatprep.subr.mxu0 %v518_v48 }
  0xa8   : > { %1345 = vmatpush3.msra.mxu1 %v502_v32  ;;  %1389 = vmatpush3.msra.mxu0 %v518_v48  ;;  %v537_v32 = vld [vmem:[%s2001_s10 + $0x140] sm:$0xff] }
  0xa9   : > { %1346 = vmatprep.subr.mxu1 %v501_v33  ;;  %1390 = vmatprep.subr.mxu0 %v517_v49 }
  0xaa   : > { %1347 = vmatpush3.msra.mxu1 %v501_v33  ;;  %1391 = vmatpush3.msra.mxu0 %v517_v49  ;;  %v536_v33 = vld [vmem:[%s2001_s10 + $0x138] sm:$0xff] }
  0xab   : > { %1348 = vmatprep.subr.mxu1 %v500_v34  ;;  %1392 = vmatprep.subr.mxu0 %v516_v58 }
  0xac   : > { %1349 = vmatpush3.msra.mxu1 %v500_v34  ;;  %1393 = vmatpush3.msra.mxu0 %v516_v58  ;;  %v535_v34 = vld [vmem:[%s2001_s10 + $0x130] sm:$0xff]  ;;  %v529_v58 = vld [vmem:[%s2001_s10 + $0x100] sm:$0xff] }
  0xad   : > { %1350 = vmatprep.subr.mxu1 %v499_v35  ;;  %1394 = vmatprep.subr.mxu0 %v515_v59 }
  0xae   : > { %1351 = vmatpush3.msra.mxu1 %v499_v35  ;;  %1395 = vmatpush3.msra.mxu0 %v515_v59  ;;  %v534_v35 = vld [vmem:[%s2001_s10 + $0x128] sm:$0xff] }
  0xaf   : > { %1352 = vmatprep.subr.mxu1 %v498_v36  ;;  %1396 = vmatprep.subr.mxu0 %v514_v60 }
  0xb0   : > { %1353 = vmatpush3.msra.mxu1 %v498_v36  ;;  %1397 = vmatpush3.msra.mxu0 %v514_v60  ;;  %v533_v36 = vld [vmem:[%s2001_s10 + $0x120] sm:$0xff] }
  0xb1   : > { %1354 = vmatprep.subr.mxu1 %v497_v37  ;;  %1398 = vmatprep.subr.mxu0 %v513_v61 }
  0xb2   : > { %1355 = vmatpush3.msra.mxu1 %v497_v37  ;;  %1399 = vmatpush3.msra.mxu0 %v513_v61  ;;  %v532_v37 = vld [vmem:[%s2001_s10 + $0x118] sm:$0xff] }
  0xb3   : > { %1412 = vmatprep.subr.mxu1 %v1797_v24  ;;  %1431 = vmatprep.subr.mxu0 %v1797_v24  ;;  %v856_v61 = vld [vmem:[#allocation3] sm:$0x3] }
 0x153   : > { %v1314_v50 = vpop.f32.mrf.mxu1 }
 0x155   : > { %v458_v51 = vpop.f32.mrf.mxu1 }
 0x156   : > { %1356 = vmatprep.mubr.f32.mxu1 %v458_v51 }
 0x157   : > { %v1317_v52 = vpop.f32.mrf.mxu1  ;;  %1357 = vmatmul.mubr.f32.vlgmr.msra.gmra.mxu1 %v1314_v50 }
 0x159   : > { %v468_v53 = vpop.f32.mrf.mxu1 }
 0x15a   : > { %1359 = vmatprep.mubr.f32.mxu1 %v468_v53 }
 0x15b   : > { %v1320_v54 = vpop.f32.mrf.mxu1  ;;  %1360 = vmatmul.mubr.f32.gmra.mxu1 %v1317_v52 }
 0x15d   : > { %v478_v55 = vpop.f32.mrf.mxu1 }
 0x15e   : > { %1362 = vmatprep.mubr.f32.mxu1 %v478_v55 }
 0x15f   : > { %v1323_v56 = vpop.f32.mrf.mxu1  ;;  %1363 = vmatmul.mubr.f32.gmra.mxu1 %v1320_v54 }
 0x161   : > { %v488_v57 = vpop.f32.mrf.mxu1 }
 0x162   : > { %1365 = vmatprep.mubr.f32.mxu1 %v488_v57  ;;  %v782_v57 = vld [vmem:[%s2141_s2] sm:$0x3] }
 0x163   : > { %1366 = vmatmul.mubr.f32.gmra.mxu1 %v1323_v56 }
 0x164   : > { %1428 = vmatprep.mubr.msk.f32.mxu1 %vm1798_vm1, %v1797_v24 }
 0x217   : > { %v1358_v63 = vpop.f32.mrf.mxu1 }
 0x218   : > { %v624_v0 = vadd.f32 %v1358_v63, %v1158_v62 }
 0x219   : > { %v618_v1 = vpop.f32.mrf.mxu1 }
 0x21a   : > { %v619_v2 = vadd.f32 %v1158_v62, %v618_v1  ;;  %v658_v5 = vmax.f32 %v624_v0, 0.0 }
 0x21b   : > { %v1361_v3 = vpop.f32.mrf.mxu1 }
 0x21c   : > { %v657_v4 = vmax.f32 %v619_v2, 0.0  ;;  %v634_v6 = vadd.f32 %v1361_v3, %v1158_v62 }
 0x21d   : > { %v628_v8 = vpop.f32.mrf.mxu1 }
 0x21e   : > { %v629_v9 = vadd.f32 %v1158_v62, %v628_v8  ;;  %1400 = vmatprep.mubr.f32.mxu0 %v657_v4  ;;  %v660_v12 = vmax.f32 %v634_v6, 0.0 }
 0x21f   : > { %v1364_v10 = vpop.f32.mrf.mxu1  ;;  %1401 = vmatmul.mubr.f32.vlgmr.msra.gmra.mxu0 %v658_v5 }
 0x220   : > { %v659_v11 = vmax.f32 %v629_v9, 0.0  ;;  %v644_v13 = vadd.f32 %v1364_v10, %v1158_v62  ;;  %1432 = vmatpush3.msra.mxu0 %v544_v25 }
 0x221   : > { %v638_v14 = vpop.f32.mrf.mxu1  ;;  %1433 = vmatprep.subr.mxu0 %v1797_v24 }
 0x222   : > { %v639_v15 = vadd.f32 %v1158_v62, %v638_v14  ;;  %1403 = vmatprep.mubr.f32.mxu0 %v659_v11  ;;  %v662_v18 = vmax.f32 %v644_v13, 0.0  ;;  %1434 = vmatpush3.msra.mxu0 %v543_v26 }
 0x223   : > { %v1367_v16 = vpop.f32.mrf.mxu1  ;;  %1404 = vmatmul.mubr.f32.gmra.mxu0 %v660_v12  ;;  %1435 = vmatprep.subr.mxu0 %v1797_v24 }
 0x224   : > { %v661_v17 = vmax.f32 %v639_v15, 0.0  ;;  %v654_v19 = vadd.f32 %v1367_v16, %v1158_v62  ;;  %1436 = vmatpush3.msra.mxu0 %v542_v27 }
 0x225   : > { %v648_v20 = vpop.f32.mrf.mxu1  ;;  %1437 = vmatprep.subr.mxu0 %v1797_v24 }
 0x226   : > { %v649_v21 = vadd.f32 %v1158_v62, %v648_v20  ;;  %1406 = vmatprep.mubr.f32.mxu0 %v661_v17  ;;  %v664_v23 = vmax.f32 %v654_v19, 0.0  ;;  %1438 = vmatpush3.msra.mxu0 %v541_v28 }
 0x227   : > { %1407 = vmatmul.mubr.f32.gmra.mxu0 %v662_v18  ;;  %1439 = vmatprep.subr.mxu0 %v1797_v24 }
 0x228   : > { %v663_v22 = vmax.f32 %v649_v21, 0.0  ;;  %1440 = vmatpush3.msra.mxu0 %v540_v29 }
 0x229   : > { %1441 = vmatprep.subr.mxu0 %v1797_v24 }
 0x22a   : > { %1409 = vmatprep.mubr.f32.mxu0 %v663_v22  ;;  %1442 = vmatpush3.msra.mxu0 %v539_v30 }
 0x22b   : > { %1410 = vmatmul.mubr.f32.gmra.mxu0 %v664_v23  ;;  %1443 = vmatprep.subr.mxu0 %v1797_v24 }
 0x22c   : > { %1463 = vmatprep.mubr.msk.f32.mxu0 %vm1798_vm1, %v1797_v24  ;;  %1444 = vmatpush3.msra.mxu0 %v538_v31 }
 0x22d   : > { %1445 = vmatprep.subr.mxu0 %v1797_v24 }
 0x22e   : > { %1446 = vmatpush3.msra.mxu0 %v537_v32 }
 0x22f   : > { %1447 = vmatprep.subr.mxu0 %v1797_v24 }
 0x230   : > { %1448 = vmatpush3.msra.mxu0 %v536_v33 }
 0x231   : > { %1449 = vmatprep.subr.mxu0 %v1797_v24 }
 0x232   : > { %1450 = vmatpush3.msra.mxu0 %v535_v34 }
 0x233   : > { %1451 = vmatprep.subr.mxu0 %v1797_v24 }
 0x234   : > { %1452 = vmatpush3.msra.mxu0 %v534_v35 }
 0x235   : > { %1453 = vmatprep.subr.mxu0 %v1797_v24 }
 0x236   : > { %1454 = vmatpush3.msra.mxu0 %v533_v36 }
 0x237   : > { %1455 = vmatprep.subr.mxu0 %v1797_v24 }
 0x238   : > { %1456 = vmatpush3.msra.mxu0 %v532_v37 }
 0x239   : > { %1457 = vmatprep.subr.mxu0 %v1797_v24 }
 0x23a   : > { %1458 = vmatpush3.msra.mxu0 %v531_v38 }
 0x23b   : > { %1459 = vmatprep.subr.mxu0 %v1797_v24 }
 0x23c   : > { %1460 = vmatpush3.msra.mxu0 %v530_v39 }
 0x23d   : > { %1461 = vmatprep.subr.mxu0 %v1797_v24 }
 0x23e   : > { %1462 = vmatpush3.msra.mxu0 %v529_v58 }
 0x2df   : > { %v1402_v41 = vpop.f32.mrf.mxu0 }
 0x2e0   : > { %v741_v42 = vadd.f32 %v1402_v41, %v1159_v40 }
 0x2e1   : > { %v735_v43 = vpop.f32.mrf.mxu0 }
 0x2e2   : > { %775 = vst [vmem:[#allocation2 + $0x8] sm:$0xff] %v741_v42  ;;  %v736_v44 = vadd.f32 %v1159_v40, %v735_v43 }
 0x2e3   : > { %v1405_v45 = vpop.f32.mrf.mxu0 }
 0x2e4   : > { %774 = vst [vmem:[#allocation2] sm:$0xff] %v736_v44  ;;  %v751_v46 = vadd.f32 %v1405_v45, %v1159_v40 }
 0x2e5   : > { %v745_v47 = vpop.f32.mrf.mxu0 }
 0x2e6   : > { %777 = vst [vmem:[#allocation2 + $0x18] sm:$0xff] %v751_v46  ;;  %v746_v48 = vadd.f32 %v1159_v40, %v745_v47 }
 0x2e7   : > { %v1408_v49 = vpop.f32.mrf.mxu0 }
 0x2e8   : > { %776 = vst [vmem:[#allocation2 + $0x10] sm:$0xff] %v746_v48  ;;  %v761_v50 = vadd.f32 %v1408_v49, %v1159_v40 }
 0x2e9   : > { %v755_v51 = vpop.f32.mrf.mxu0 }
 0x2ea   : > { %779 = vst [vmem:[#allocation2 + $0x28] sm:$0xff] %v761_v50  ;;  %v756_v52 = vadd.f32 %v1159_v40, %v755_v51 }
 0x2eb   : > { %v1411_v53 = vpop.f32.mrf.mxu0 }
 0x2ec   : > { %778 = vst [vmem:[#allocation2 + $0x20] sm:$0xff] %v756_v52  ;;  %v771_v54 = vadd.f32 %v1411_v53, %v1159_v40 }
 0x2ed   : > { %v765_v55 = vpop.f32.mrf.mxu0 }
 0x2ee   : > { %781 = vst [vmem:[#allocation2 + $0x38] sm:$0xff] %v771_v54  ;;  %v766_v56 = vadd.f32 %v1159_v40, %v765_v55  ;;  %1413 = vmatpush3.msra.mxu1 %v771_v54 }
 0x2ef   : > { %1414 = vmatprep.subr.mxu1 %v1797_v24 }
 0x2f0   : > { %780 = vst [vmem:[#allocation2 + $0x30] sm:$0xff] %v766_v56  ;;  %1415 = vmatpush3.msra.mxu1 %v766_v56 }
 0x2f1   : > { %1416 = vmatprep.subr.mxu1 %v1797_v24 }
 0x2f2   : > { %1417 = vmatpush3.msra.mxu1 %v761_v50 }
 0x2f3   : > { %1418 = vmatprep.subr.mxu1 %v1797_v24 }
 0x2f4   : > { %1419 = vmatpush3.msra.mxu1 %v756_v52 }
 0x2f5   : > { %1420 = vmatprep.subr.mxu1 %v1797_v24 }
 0x2f6   : > { %1421 = vmatpush3.msra.mxu1 %v751_v46 }
 0x2f7   : > { %1422 = vmatprep.subr.mxu1 %v1797_v24 }
 0x2f8   : > { %1423 = vmatpush3.msra.mxu1 %v746_v48 }
 0x2f9   : > { %1424 = vmatprep.subr.mxu1 %v1797_v24 }
 0x2fa   : > { %1425 = vmatpush3.msra.mxu1 %v741_v42 }
 0x2fb   : > { %1426 = vmatprep.subr.mxu1 %v1797_v24 }
 0x2fc   : > { %1427 = vmatpush3.msra.mxu1 %v736_v44 }
 0x2fd   : > { %1429 = vmatmul.mubr.msk.f32.vlgmr.msra.gmra.mxu1 %vm367_vm0, %v782_v57 }
 0x3bd   : > { %v852_v59 = vpop.f32.mrf.mxu1 }
 0x3be   : > { %1464 = vmatmul.mubr.f32.vlgmr.msra.gmra.mxu0 %v852_v59 }
 0x3bf   : > { %v1430_v60 = vpop.f32.mrf.mxu1 }
 0x47d   : > { %932 = sbr.rel (%p1161_p10) target bundleno = 1383 (0x567), region = 72 }
 0x47e   : > { %v923_v62 = vpop.f32.mrf.mxu0 }
 0x47f   : > { %v927_v63 = vadd.f32 %v923_v62, %v856_v61 }
 0x480   : > { %v1465_v0 = vpop.f32.mrf.mxu0 }
 0x481   : > { %928 = vst [vmem:[#allocation3] sm:$0x3] %v927_v63 }
 0x482   : > { %v955_v1 = vld [vmem:[#allocation11 + $0x78] sm:$0xff]  ;;  %v1799_v2 = vmov 0.0   ;;  %v954_v3 = vld [vmem:[#allocation11 + $0x70] sm:$0xff]  ;;  %vm1800_vm2 = vmmov 0   ;;  %v953_v4 = vld [vmem:[#allocation11 + $0x68] sm:$0xff] }
 0x483   : > { %1466 = vmatprep.subr.mxu0 %v1799_v2  ;;  %1498 = vmatprep.mubr.msk.f32.mxu0 %vm1800_vm2, %v1799_v2  ;;  %v952_v5 = vld [vmem:[#allocation11 + $0x60] sm:$0xff]  ;;  %v951_v6 = vld [vmem:[#allocation11 + $0x58] sm:$0xff]  ;;  %v950_v8 = vld [vmem:[#allocation11 + $0x50] sm:$0xff] }
 0x484   : > { %1467 = vmatpush3.msra.mxu0 %v955_v1  ;;  %v949_v9 = vld [vmem:[#allocation11 + $0x48] sm:$0xff]  ;;  %v948_v10 = vld [vmem:[#allocation11 + $0x40] sm:$0xff]  ;;  %v947_v11 = vld [vmem:[#allocation11 + $0x38] sm:$0xff] }
 0x485   : > { %1468 = vmatprep.subr.mxu0 %v1799_v2  ;;  %v946_v12 = vld [vmem:[#allocation11 + $0x30] sm:$0xff]  ;;  %v945_v13 = vld [vmem:[#allocation11 + $0x28] sm:$0xff]  ;;  %v944_v14 = vld [vmem:[#allocation11 + $0x20] sm:$0xff] }
 0x486   : > { %1469 = vmatpush3.msra.mxu0 %v954_v3  ;;  %v943_v16 = vld [vmem:[#allocation11 + $0x18] sm:$0xff]  ;;  %v942_v17 = vld [vmem:[#allocation11 + $0x10] sm:$0xff]  ;;  %v941_v19 = vld [vmem:[#allocation11 + $0x8] sm:$0xff] }
 0x487   : > { %1470 = vmatprep.subr.mxu0 %v1799_v2  ;;  %v940_v20 = vld [vmem:[#allocation11] sm:$0xff]  ;;  %v1163_v22 = vld [vmem:[%s2145_s6] ss:$0 sm:$0xff] }
 0x488   : > { %1471 = vmatpush3.msra.mxu0 %v953_v4  ;;  %v933_v15 = vld [vmem:[#allocation3] sm:$0x3] }
 0x489   : > { %1472 = vmatprep.subr.mxu0 %v1799_v2  ;;  %v938_v18 = vadd.f32 %v2019_v7, %v933_v15 }
 0x48a   : > { %1473 = vmatpush3.msra.mxu0 %v952_v5 }
 0x48b   : > { %1474 = vmatprep.subr.mxu0 %v1799_v2  ;;  %v939_v21 = vmax.f32 %v938_v18, 0.0 }
 0x48c   : > { %1475 = vmatpush3.msra.mxu0 %v951_v6 }
 0x48d   : > { %1476 = vmatprep.subr.mxu0 %v1799_v2 }
 0x48e   : > { %1477 = vmatpush3.msra.mxu0 %v950_v8 }
 0x48f   : > { %1478 = vmatprep.subr.mxu0 %v1799_v2 }
 0x490   : > { %1479 = vmatpush3.msra.mxu0 %v949_v9 }
 0x491   : > { %1480 = vmatprep.subr.mxu0 %v1799_v2 }
 0x492   : > { %1481 = vmatpush3.msra.mxu0 %v948_v10 }
 0x493   : > { %1482 = vmatprep.subr.mxu0 %v1799_v2 }
 0x494   : > { %1483 = vmatpush3.msra.mxu0 %v947_v11 }
 0x495   : > { %1484 = vmatprep.subr.mxu0 %v1799_v2 }
 0x496   : > { %1485 = vmatpush3.msra.mxu0 %v946_v12 }
 0x497   : > { %1486 = vmatprep.subr.mxu0 %v1799_v2 }
 0x498   : > { %1487 = vmatpush3.msra.mxu0 %v945_v13 }
 0x499   : > { %1488 = vmatprep.subr.mxu0 %v1799_v2 }
 0x49a   : > { %1489 = vmatpush3.msra.mxu0 %v944_v14 }
 0x49b   : > { %1490 = vmatprep.subr.mxu0 %v1799_v2 }
 0x49c   : > { %1491 = vmatpush3.msra.mxu0 %v943_v16 }
 0x49d   : > { %1492 = vmatprep.subr.mxu0 %v1799_v2 }
 0x49e   : > { %1493 = vmatpush3.msra.mxu0 %v942_v17 }
 0x49f   : > { %1494 = vmatprep.subr.mxu0 %v1799_v2 }
 0x4a0   : > { %1495 = vmatpush3.msra.mxu0 %v941_v19 }
 0x4a1   : > { %1496 = vmatprep.subr.mxu0 %v1799_v2 }
 0x4a2   : > { %1497 = vmatpush3.msra.mxu0 %v940_v20 }
 0x4a3   : > { %1499 = vmatmul.mubr.f32.vlgmr.msra.gmra.mxu0 %v939_v21 }
 0x563   : > { %v1027_v23 = vpop.f32.mrf.mxu0 }
 0x564   : > { %v1028_v24 = vadd.f32 %v1163_v22, %v1027_v23 }
 0x565   : > { %v1500_v25 = vpop.f32.mrf.mxu0 }
 0x566   : > { %1031 = vst [vmem:[#allocation13] sm:$0x3] %v1028_v24 }
 0x567 PF: > { %p1538_p13 = scmp.eq.s32.totalorder %s1922_s20, 2  ;;  %s1801_s15 = smov [#allocation13]  }
 0x568   : > { %s1039_s17 = sshll.u32 %s1801_s15, 4  ;;  %s1040_s17 = int_to_ptr.vmem [resolvable:$true] %s1039_s17 }
 0x569   : > { %s1713_s24 = scalar_lea.vmem %s1040_s17, 32  ;;  %p1720_p1 = scmp.lt.s32.totalorder %s1040_s17, %s1040_s17 }
 0x56a   : > { %p1714_p0 = scmp.ne.s32.totalorder %s1040_s17, %s1713_s24  ;;  %p1721_p5 = scmp.lt.s32.totalorder %s1713_s24, %s1713_s24 }
 0x56c   : > { %p1715_p3 = pnand %p1714_p0, %p1538_p13  ;;  %p1722_p12 = por %p1721_p5, %p1720_p1 }
 0x56e   : > { %p1716_p4 = pneg %p1715_p3 }
 0x570   : > { %p1723_p2 = pnand %p1722_p12, %p1716_p4 }
 0x572   : > { %1726 = shalt.err (!%p1723_p2)
}
 0x573   : > { %1516 = dma.vmem_to_hbm [thread:$0]  (%p1538_p13), %s1040_s17, 32, %s2146_s7, [#allocation7]  }
 0x574   : > { %1768 = dma.done.wait (%p1538_p13), [#allocation7], 32  }
 0x575   : > { %1770 = vsyncadd (%p1538_p13), [#allocation7], 4294967264 }
 0x576 PF: > { %p20_p6 = scmp.ge.s32.totalorder %s1863_s28, 5   ;;  %s2168_s24 = smov %s1777_s25 }
 0x577   : > { %s2169_s25 = smov %s1781_s26  ;;  %s2170_s26 = smov %s1872_s8 }
 0x578   : > { %s2171_s27 = smov %s1863_s28  ;;  %22 = sbr.rel (!%p20_p6) target bundleno = 9 (0x9), region = 113 }
 0x57d   :  { %1052 = vsyncpa [#allocation6], 1 }
 0x57e   :  { %1054 = vsyncpa [#allocation6 + $0x1], 1 }
 0x57f   :  { %1055 = vsyncpa [#allocation9], 1 }
 0x580   :  { %1057 = vsyncpa [#allocation9 + $0x1], 1 }
 0x581   :  { %1058 = vsyncpa [#allocation12], 1 }
 0x582   :  { %1059 = vsyncpa [#allocation7], 1 }
 0x583   :  { %1061 = vsyncpa [#allocation7 + $0x1], 1 }
 0x584   :  { %1062 = vsyncmov [#allocation4] }
 0x587   :  { %s1063_s20 = vpop.sfrf %1062 }
 0x588   :  { %p1168_p8 = scmp.ne.s32.totalorder %s1063_s20, 0 }
 0x58a   :  { %1067 = shalt.err (%p1168_p8)  }

</bundles_post_ra>
